<compile_context>
chip_gen: v7x
topology: tpu7x:2x2x1
jax: 0.10.0
libtpu: 0.0.40
codegen_flags: <defaults>
</compile_context>

<pallas_src>
import math
import functools

import jax
import jax.numpy as jnp
from jax import lax
from jax.experimental import pallas as pl
from jax.experimental.pallas import tpu as pltpu


def _tmsa_kernel(xs_ref, xt_ref, w_top_ref, w_bot_ref, b_ref, o_ref, *,
                 num_heads, d_k, d_model, batch_per_block, seq_len):
    H, D, S, Bt = num_heads, d_model, seq_len, batch_per_block
    R = Bt * S  # token rows handled by this grid step

    # Inputs arrive as f32 straight from HBM (no wrapper-side concat/cast pass);
    # cast to bf16 in-register for the MXU.
    xs = xs_ref[...].astype(jnp.bfloat16)   # (R, D)
    xt = xt_ref[...].astype(jnp.bfloat16)   # (R, D)

    # Fused QKV projection for every token row in this block: two bf16 MXU
    # matmuls accumulated in f32 (replaces six f32 matmuls + six bias adds).
    # The 1/sqrt(d_k) attention scale is pre-folded into the Q weight columns
    # and Q bias by pack_tmsa_params().
    qkv = (jnp.dot(xs, w_top_ref[...], preferred_element_type=jnp.float32)
           + jnp.dot(xt, w_bot_ref[...], preferred_element_type=jnp.float32)
           + b_ref[...])                                            # (R, 3D) f32

    # Per-head scaled-dot-product attention, batched over the Bt batch elements
    # of this block.  The scalar attn_bias cancels under softmax shift
    # invariance, so the raw (pre-scaled) scores are used directly.
    # TODO(synk): the optional `mask` argument of the PyTorch forward is not
    # implemented (forward is exercised with mask=None).
    # TODO(synk): for large S/D switch to flash-style query/KV tiling (online
    # softmax); budget tiles against 64 MiB physical VMEM on v7x (128 MiB on
    # v5e/v6e) and set vmem_limit_bytes explicitly.
    head_outs = []
    for h in range(H):
        lo = h * d_k
        # Head slices of the fused output; reshapes only split the leading
        # (token-row) dim, so no lane/sublane relayout is introduced.
        qh = qkv[:, lo:lo + d_k].reshape(Bt, S, d_k).astype(jnp.bfloat16)
        kh = qkv[:, D + lo:D + lo + d_k].reshape(Bt, S, d_k).astype(jnp.bfloat16)
        vh = qkv[:, 2 * D + lo:2 * D + lo + d_k].reshape(Bt, S, d_k).astype(jnp.bfloat16)

        # Q.K^T batched over Bt, contracting the last dims (no XLU transpose).
        s = lax.dot_general(qh, kh, (((2,), (2,)), ((0,), (0,))),
                            preferred_element_type=jnp.float32)     # (Bt, S, S) f32

        m = jnp.max(s, axis=-1, keepdims=True)                      # f32 stats
        p = jnp.exp(s - m)                                          # unnormalized probs
        l = jnp.sum(p, axis=-1, keepdims=True)                      # (Bt, S, 1)

        oh = lax.dot_general(p.astype(jnp.bfloat16), vh,
                             (((2,), (1,)), ((0,), (0,))),
                             preferred_element_type=jnp.float32)    # (Bt, S, d_k) f32
        # Deferred normalization on the small head output (EUP reciprocal)
        # instead of dividing the (Bt, S, S) probability tensor.
        oh = oh * pl.reciprocal(l, approx=True)
        head_outs.append(oh.reshape(R, d_k))

    # One full-width store per block instead of per-head masked sub-lane stores.
    o_ref[...] = jnp.concatenate(head_outs, axis=-1).astype(o_ref.dtype)


def pack_tmsa_params(params, *, num_heads):
    """One-time packing of the six projections (call at init, not per forward).

    Returns bf16 (D, 3D) weights for the spatial and temporal streams with the
    1/sqrt(d_k) scale folded into the Q columns, plus one f32 (1, 3D) bias.
    """
    D = params["wqs"].shape[0]
    d_k = D // num_heads
    scale = 1.0 / math.sqrt(d_k)
    w_top = jnp.concatenate(
        [params["wqs"] * scale, params["wks"], params["wvs"]], axis=1
    ).astype(jnp.bfloat16)                                           # (D, 3D)
    w_bot = jnp.concatenate(
        [params["wqt"] * scale, params["wkt"], params["wvt"]], axis=1
    ).astype(jnp.bfloat16)                                           # (D, 3D)
    bias = jnp.concatenate(
        [(params["bqs"] + params["bqt"]) * scale,
         params["bks"] + params["bkt"],
         params["bvs"] + params["bvt"]]
    ).reshape(1, 3 * D).astype(jnp.float32)                          # (1, 3D)
    # attn_bias is a single scalar added to every logit; softmax is
    # shift-invariant so it has no effect on the output -> not packed.
    return {"w_top": w_top, "w_bot": w_bot, "bias": bias}


def tmsa_pallas(Xs, Xt, packed, *, num_heads, num_batch_blocks=1):
    """Fused TMSA forward.  `packed` comes from pack_tmsa_params().

    num_batch_blocks: grid steps along the batch.  1 (default) collapses the
    whole batch into one step (best on v5e/v6e); use 2 on v7x so both
    TensorCores get a "parallel" block.
    """
    B, S, D = Xs.shape
    d_k = D // num_heads
    nb = num_batch_blocks
    assert B % nb == 0, "batch must divide num_batch_blocks"
    Bt = B // nb
    R_total, R_blk = B * S, Bt * S

    # Pure metadata reshapes (contiguous row-major): no HBM copy.
    xs2 = Xs.reshape(R_total, D)
    xt2 = Xt.reshape(R_total, D)

    kernel = functools.partial(
        _tmsa_kernel, num_heads=num_heads, d_k=d_k, d_model=D,
        batch_per_block=Bt, seq_len=S)

    row_spec = pl.BlockSpec((R_blk, D), lambda i: (i, 0))
    # Batch-invariant operands: whole-array VMEM residents (single copy, not
    # double-buffered by the pipeline).
    vmem_full = pl.BlockSpec(memory_space=pltpu.MemorySpace.VMEM)

    out2 = pl.pallas_call(
        kernel,
        out_shape=jax.ShapeDtypeStruct((R_total, D), Xs.dtype),
        grid_spec=pltpu.PrefetchScalarGridSpec(
            num_scalar_prefetch=0,
            grid=(nb,),
            in_specs=[row_spec, row_spec, vmem_full, vmem_full, vmem_full],
            out_specs=pl.BlockSpec((R_blk, D), lambda i: (i, 0)),
        ),
        compiler_params=pltpu.CompilerParams(
            dimension_semantics=("parallel",)),
    )(xs2, xt2, packed["w_top"], packed["w_bot"], packed["bias"])

    return out2.reshape(B, S, D)


def tmsa_reference(Xs, Xt, params, *, num_heads):
    """Pure-JAX f32 reference mirroring the PyTorch forward exactly."""
    B, S, D = Xs.shape
    d_k = D // num_heads

    def lin(x, w, b):
        return x @ w + b

    Q = lin(Xs, params["wqs"], params["bqs"]) + lin(Xt, params["wqt"], params["bqt"])
    K = lin(Xs, params["wks"], params["bks"]) + lin(Xt, params["wkt"], params["bkt"])
    V = lin(Xs, params["wvs"], params["bvs"]) + lin(Xt, params["wvt"], params["bvt"])

    def split(x):  # (B,S,D) -> (B,H,S,dk)
        return x.reshape(B, S, num_heads, d_k).transpose(0, 2, 1, 3)

    Qh, Kh, Vh = split(Q), split(K), split(V)
    scores = jnp.einsum("bhqd,bhkd->bhqk", Qh, Kh) / math.sqrt(d_k)
    scores = scores + params["attn_bias"].reshape(1, 1, 1, 1)
    probs = jax.nn.softmax(scores, axis=-1)
    out = jnp.einsum("bhqk,bhkd->bhqd", probs, Vh)
    return out.transpose(0, 2, 1, 3).reshape(B, S, D)


def init_params(key, d_model):
    ks = jax.random.split(key, 12)
    names_w = ["wqs", "wqt", "wks", "wkt", "wvs", "wvt"]
    names_b = ["bqs", "bqt", "bks", "bkt", "bvs", "bvt"]
    scale = 1.0 / math.sqrt(d_model)
    params = {}
    for i, n in enumerate(names_w):
        params[n] = jax.random.uniform(ks[i], (d_model, d_model),
                                       jnp.float32, -scale, scale)
    for i, n in enumerate(names_b):
        params[n] = jax.random.uniform(ks[6 + i], (d_model,),
                                       jnp.float32, -scale, scale)
    # nn.Parameter(torch.zeros(1, 1, 1, 1))
    params["attn_bias"] = jnp.zeros((1, 1, 1, 1), jnp.float32)
    return params


if __name__ == "__main__":
    B, S, D, H = 2, 8, 32, 4

    key = jax.random.PRNGKey(0)
    k_xs, k_xt, k_p = jax.random.split(key, 3)
    Xs = jax.random.normal(k_xs, (B, S, D), jnp.float32)
    Xt = jax.random.normal(k_xt, (B, S, D), jnp.float32)
    params = init_params(k_p, D)

    # Weight packing happens once, outside the per-call (hot) path.
    packed = pack_tmsa_params(params, num_heads=H)

    out = tmsa_pallas(Xs, Xt, packed, num_heads=H, num_batch_blocks=1)
    out = jax.block_until_ready(out)

    ref = tmsa_reference(Xs, Xt, params, num_heads=H)
    assert out.shape == (B, S, D)
    # Kernel matmuls run in bf16 on the MXU with f32 accumulation; the reference
    # is pure f32, so compare at bf16-appropriate tolerance.
    assert jnp.allclose(out, ref, atol=5e-2, rtol=5e-2), \
        f"max abs err = {jnp.max(jnp.abs(out - ref))}"

    print("KERNEL_OK")
</pallas_src>

<mosaic_0001>
module attributes {stable_mosaic.version = 11 : i64} {
  func.func @_tmsa_kernel(%arg0: i32, %arg1: memref<16x32xf32, #tpu.memory_space<vmem>>, %arg2: memref<16x32xf32, #tpu.memory_space<vmem>>, %arg3: memref<32x96xbf16, #tpu.memory_space<vmem>>, %arg4: memref<32x96xbf16, #tpu.memory_space<vmem>>, %arg5: memref<1x96xf32, #tpu.memory_space<vmem>>, %arg6: memref<16x32xf32, #tpu.memory_space<vmem>>) attributes {dimension_semantics = [#tpu.dimension_semantics<parallel>], iteration_bounds = array<i64: 1>, scalar_prefetch = 0 : i64, scratch_operands = 0 : i64, tpu.core_type = #tpu.core_type<tc>, window_params = [{transform_indices = @transform_0, window_bounds = array<i64: 16, 32>}, {transform_indices = @transform_1, window_bounds = array<i64: 16, 32>}, {pipeline_mode = #tpu.pipeline_mode<synchronous>, transform_indices = @transform_2, window_bounds = array<i64: 32, 96>}, {pipeline_mode = #tpu.pipeline_mode<synchronous>, transform_indices = @transform_3, window_bounds = array<i64: 32, 96>}, {pipeline_mode = #tpu.pipeline_mode<synchronous>, transform_indices = @transform_4, window_bounds = array<i64: 1, 96>}, {transform_indices = @transform_5, window_bounds = array<i64: 16, 32>}]} {
    %c0 = arith.constant 0 : index
    %c0_0 = arith.constant 0 : index
    %0 = vector.load %arg1[%c0, %c0_0] : memref<16x32xf32, #tpu.memory_space<vmem>>, vector<16x32xf32>
    %1 = arith.truncf %0 : vector<16x32xf32> to vector<16x32xbf16>
    %c0_1 = arith.constant 0 : index
    %c0_2 = arith.constant 0 : index
    %2 = vector.load %arg2[%c0_1, %c0_2] : memref<16x32xf32, #tpu.memory_space<vmem>>, vector<16x32xf32>
    %3 = arith.truncf %2 : vector<16x32xf32> to vector<16x32xbf16>
    %c0_3 = arith.constant 0 : index
    %c0_4 = arith.constant 0 : index
    %4 = vector.load %arg3[%c0_3, %c0_4] : memref<32x96xbf16, #tpu.memory_space<vmem>>, vector<32x96xbf16>
    %cst = arith.constant dense<0.000000e+00> : vector<16x96xf32>
    %5 = tpu.matmul %1, %4, %cst {dimension_numbers = #tpu.dot_dimension_numbers<[1], [0], [0], [1], [0, 0, 1, 1], [], []>} : vector<16x32xbf16>, vector<32x96xbf16>, vector<16x96xf32> -> vector<16x96xf32>
    %c0_5 = arith.constant 0 : index
    %c0_6 = arith.constant 0 : index
    %6 = vector.load %arg4[%c0_5, %c0_6] : memref<32x96xbf16, #tpu.memory_space<vmem>>, vector<32x96xbf16>
    %cst_7 = arith.constant dense<0.000000e+00> : vector<16x96xf32>
    %7 = tpu.matmul %3, %6, %cst_7 {dimension_numbers = #tpu.dot_dimension_numbers<[1], [0], [0], [1], [0, 0, 1, 1], [], []>} : vector<16x32xbf16>, vector<32x96xbf16>, vector<16x96xf32> -> vector<16x96xf32>
    %8 = arith.addf %5, %7 : vector<16x96xf32>
    %c0_8 = arith.constant 0 : index
    %c0_9 = arith.constant 0 : index
    %9 = vector.load %arg5[%c0_8, %c0_9] : memref<1x96xf32, #tpu.memory_space<vmem>>, vector<1x96xf32>
    %10 = vector.broadcast %9 : vector<1x96xf32> to vector<16x96xf32>
    %11 = arith.addf %8, %10 : vector<16x96xf32>
    %12 = vector.extract_strided_slice %11 {offsets = [0, 0], sizes = [16, 8], strides = [1, 1]} : vector<16x96xf32> to vector<16x8xf32>
    %13 = vector.shape_cast %12 : vector<16x8xf32> to vector<2x8x8xf32>
    %14 = arith.truncf %13 : vector<2x8x8xf32> to vector<2x8x8xbf16>
    %15 = vector.extract_strided_slice %11 {offsets = [0, 32], sizes = [16, 8], strides = [1, 1]} : vector<16x96xf32> to vector<16x8xf32>
    %16 = vector.shape_cast %15 : vector<16x8xf32> to vector<2x8x8xf32>
    %17 = arith.truncf %16 : vector<2x8x8xf32> to vector<2x8x8xbf16>
    %18 = vector.extract_strided_slice %11 {offsets = [0, 64], sizes = [16, 8], strides = [1, 1]} : vector<16x96xf32> to vector<16x8xf32>
    %19 = vector.shape_cast %18 : vector<16x8xf32> to vector<2x8x8xf32>
    %20 = arith.truncf %19 : vector<2x8x8xf32> to vector<2x8x8xbf16>
    %cst_10 = arith.constant dense<0.000000e+00> : vector<2x8x8xf32>
    %21 = tpu.matmul %14, %17, %cst_10 {dimension_numbers = #tpu.dot_dimension_numbers<[2], [2], [1], [1], [0, 0, 0, 1, 1, 1], [0], [0]>} : vector<2x8x8xbf16>, vector<2x8x8xbf16>, vector<2x8x8xf32> -> vector<2x8x8xf32>
    %cst_11 = arith.constant dense<0xFF800000> : vector<2x8xf32>
    %22 = vector.multi_reduction <maximumf>, %21, %cst_11 [2] : vector<2x8x8xf32> to vector<2x8xf32>
    %23 = vector.shape_cast %22 : vector<2x8xf32> to vector<2x8x1xf32>
    %24 = vector.broadcast %23 : vector<2x8x1xf32> to vector<2x8x8xf32>
    %25 = arith.subf %21, %24 : vector<2x8x8xf32>
    %26 = math.exp %25 : vector<2x8x8xf32>
    %cst_12 = arith.constant dense<0.000000e+00> : vector<2x8xf32>
    %27 = vector.multi_reduction <add>, %26, %cst_12 [2] : vector<2x8x8xf32> to vector<2x8xf32>
    %28 = vector.shape_cast %27 : vector<2x8xf32> to vector<2x8x1xf32>
    %29 = arith.truncf %26 : vector<2x8x8xf32> to vector<2x8x8xbf16>
    %cst_13 = arith.constant dense<0.000000e+00> : vector<2x8x8xf32>
    %30 = tpu.matmul %29, %20, %cst_13 {dimension_numbers = #tpu.dot_dimension_numbers<[2], [1], [1], [2], [0, 0, 0, 1, 1, 2], [0], [0]>} : vector<2x8x8xbf16>, vector<2x8x8xbf16>, vector<2x8x8xf32> -> vector<2x8x8xf32>
    %31 = tpu.reciprocal %28 {approx = true} : vector<2x8x1xf32> -> vector<2x8x1xf32>
    %32 = vector.broadcast %31 : vector<2x8x1xf32> to vector<2x8x8xf32>
    %33 = arith.mulf %30, %32 : vector<2x8x8xf32>
    %34 = vector.shape_cast %33 : vector<2x8x8xf32> to vector<16x8xf32>
    %35 = vector.extract_strided_slice %11 {offsets = [0, 8], sizes = [16, 8], strides = [1, 1]} : vector<16x96xf32> to vector<16x8xf32>
    %36 = vector.shape_cast %35 : vector<16x8xf32> to vector<2x8x8xf32>
    %37 = arith.truncf %36 : vector<2x8x8xf32> to vector<2x8x8xbf16>
    %38 = vector.extract_strided_slice %11 {offsets = [0, 40], sizes = [16, 8], strides = [1, 1]} : vector<16x96xf32> to vector<16x8xf32>
    %39 = vector.shape_cast %38 : vector<16x8xf32> to vector<2x8x8xf32>
    %40 = arith.truncf %39 : vector<2x8x8xf32> to vector<2x8x8xbf16>
    %41 = vector.extract_strided_slice %11 {offsets = [0, 72], sizes = [16, 8], strides = [1, 1]} : vector<16x96xf32> to vector<16x8xf32>
    %42 = vector.shape_cast %41 : vector<16x8xf32> to vector<2x8x8xf32>
    %43 = arith.truncf %42 : vector<2x8x8xf32> to vector<2x8x8xbf16>
    %cst_14 = arith.constant dense<0.000000e+00> : vector<2x8x8xf32>
    %44 = tpu.matmul %37, %40, %cst_14 {dimension_numbers = #tpu.dot_dimension_numbers<[2], [2], [1], [1], [0, 0, 0, 1, 1, 1], [0], [0]>} : vector<2x8x8xbf16>, vector<2x8x8xbf16>, vector<2x8x8xf32> -> vector<2x8x8xf32>
    %cst_15 = arith.constant dense<0xFF800000> : vector<2x8xf32>
    %45 = vector.multi_reduction <maximumf>, %44, %cst_15 [2] : vector<2x8x8xf32> to vector<2x8xf32>
    %46 = vector.shape_cast %45 : vector<2x8xf32> to vector<2x8x1xf32>
    %47 = vector.broadcast %46 : vector<2x8x1xf32> to vector<2x8x8xf32>
    %48 = arith.subf %44, %47 : vector<2x8x8xf32>
    %49 = math.exp %48 : vector<2x8x8xf32>
    %cst_16 = arith.constant dense<0.000000e+00> : vector<2x8xf32>
    %50 = vector.multi_reduction <add>, %49, %cst_16 [2] : vector<2x8x8xf32> to vector<2x8xf32>
    %51 = vector.shape_cast %50 : vector<2x8xf32> to vector<2x8x1xf32>
    %52 = arith.truncf %49 : vector<2x8x8xf32> to vector<2x8x8xbf16>
    %cst_17 = arith.constant dense<0.000000e+00> : vector<2x8x8xf32>
    %53 = tpu.matmul %52, %43, %cst_17 {dimension_numbers = #tpu.dot_dimension_numbers<[2], [1], [1], [2], [0, 0, 0, 1, 1, 2], [0], [0]>} : vector<2x8x8xbf16>, vector<2x8x8xbf16>, vector<2x8x8xf32> -> vector<2x8x8xf32>
    %54 = tpu.reciprocal %51 {approx = true} : vector<2x8x1xf32> -> vector<2x8x1xf32>
    %55 = vector.broadcast %54 : vector<2x8x1xf32> to vector<2x8x8xf32>
    %56 = arith.mulf %53, %55 : vector<2x8x8xf32>
    %57 = vector.shape_cast %56 : vector<2x8x8xf32> to vector<16x8xf32>
    %58 = vector.extract_strided_slice %11 {offsets = [0, 16], sizes = [16, 8], strides = [1, 1]} : vector<16x96xf32> to vector<16x8xf32>
    %59 = vector.shape_cast %58 : vector<16x8xf32> to vector<2x8x8xf32>
    %60 = arith.truncf %59 : vector<2x8x8xf32> to vector<2x8x8xbf16>
    %61 = vector.extract_strided_slice %11 {offsets = [0, 48], sizes = [16, 8], strides = [1, 1]} : vector<16x96xf32> to vector<16x8xf32>
    %62 = vector.shape_cast %61 : vector<16x8xf32> to vector<2x8x8xf32>
    %63 = arith.truncf %62 : vector<2x8x8xf32> to vector<2x8x8xbf16>
    %64 = vector.extract_strided_slice %11 {offsets = [0, 80], sizes = [16, 8], strides = [1, 1]} : vector<16x96xf32> to vector<16x8xf32>
    %65 = vector.shape_cast %64 : vector<16x8xf32> to vector<2x8x8xf32>
    %66 = arith.truncf %65 : vector<2x8x8xf32> to vector<2x8x8xbf16>
    %cst_18 = arith.constant dense<0.000000e+00> : vector<2x8x8xf32>
    %67 = tpu.matmul %60, %63, %cst_18 {dimension_numbers = #tpu.dot_dimension_numbers<[2], [2], [1], [1], [0, 0, 0, 1, 1, 1], [0], [0]>} : vector<2x8x8xbf16>, vector<2x8x8xbf16>, vector<2x8x8xf32> -> vector<2x8x8xf32>
    %cst_19 = arith.constant dense<0xFF800000> : vector<2x8xf32>
    %68 = vector.multi_reduction <maximumf>, %67, %cst_19 [2] : vector<2x8x8xf32> to vector<2x8xf32>
    %69 = vector.shape_cast %68 : vector<2x8xf32> to vector<2x8x1xf32>
    %70 = vector.broadcast %69 : vector<2x8x1xf32> to vector<2x8x8xf32>
    %71 = arith.subf %67, %70 : vector<2x8x8xf32>
    %72 = math.exp %71 : vector<2x8x8xf32>
    %cst_20 = arith.constant dense<0.000000e+00> : vector<2x8xf32>
    %73 = vector.multi_reduction <add>, %72, %cst_20 [2] : vector<2x8x8xf32> to vector<2x8xf32>
    %74 = vector.shape_cast %73 : vector<2x8xf32> to vector<2x8x1xf32>
    %75 = arith.truncf %72 : vector<2x8x8xf32> to vector<2x8x8xbf16>
    %cst_21 = arith.constant dense<0.000000e+00> : vector<2x8x8xf32>
    %76 = tpu.matmul %75, %66, %cst_21 {dimension_numbers = #tpu.dot_dimension_numbers<[2], [1], [1], [2], [0, 0, 0, 1, 1, 2], [0], [0]>} : vector<2x8x8xbf16>, vector<2x8x8xbf16>, vector<2x8x8xf32> -> vector<2x8x8xf32>
    %77 = tpu.reciprocal %74 {approx = true} : vector<2x8x1xf32> -> vector<2x8x1xf32>
    %78 = vector.broadcast %77 : vector<2x8x1xf32> to vector<2x8x8xf32>
    %79 = arith.mulf %76, %78 : vector<2x8x8xf32>
    %80 = vector.shape_cast %79 : vector<2x8x8xf32> to vector<16x8xf32>
    %81 = vector.extract_strided_slice %11 {offsets = [0, 24], sizes = [16, 8], strides = [1, 1]} : vector<16x96xf32> to vector<16x8xf32>
    %82 = vector.shape_cast %81 : vector<16x8xf32> to vector<2x8x8xf32>
    %83 = arith.truncf %82 : vector<2x8x8xf32> to vector<2x8x8xbf16>
    %84 = vector.extract_strided_slice %11 {offsets = [0, 56], sizes = [16, 8], strides = [1, 1]} : vector<16x96xf32> to vector<16x8xf32>
    %85 = vector.shape_cast %84 : vector<16x8xf32> to vector<2x8x8xf32>
    %86 = arith.truncf %85 : vector<2x8x8xf32> to vector<2x8x8xbf16>
    %87 = vector.extract_strided_slice %11 {offsets = [0, 88], sizes = [16, 8], strides = [1, 1]} : vector<16x96xf32> to vector<16x8xf32>
    %88 = vector.shape_cast %87 : vector<16x8xf32> to vector<2x8x8xf32>
    %89 = arith.truncf %88 : vector<2x8x8xf32> to vector<2x8x8xbf16>
    %cst_22 = arith.constant dense<0.000000e+00> : vector<2x8x8xf32>
    %90 = tpu.matmul %83, %86, %cst_22 {dimension_numbers = #tpu.dot_dimension_numbers<[2], [2], [1], [1], [0, 0, 0, 1, 1, 1], [0], [0]>} : vector<2x8x8xbf16>, vector<2x8x8xbf16>, vector<2x8x8xf32> -> vector<2x8x8xf32>
    %cst_23 = arith.constant dense<0xFF800000> : vector<2x8xf32>
    %91 = vector.multi_reduction <maximumf>, %90, %cst_23 [2] : vector<2x8x8xf32> to vector<2x8xf32>
    %92 = vector.shape_cast %91 : vector<2x8xf32> to vector<2x8x1xf32>
    %93 = vector.broadcast %92 : vector<2x8x1xf32> to vector<2x8x8xf32>
    %94 = arith.subf %90, %93 : vector<2x8x8xf32>
    %95 = math.exp %94 : vector<2x8x8xf32>
    %cst_24 = arith.constant dense<0.000000e+00> : vector<2x8xf32>
    %96 = vector.multi_reduction <add>, %95, %cst_24 [2] : vector<2x8x8xf32> to vector<2x8xf32>
    %97 = vector.shape_cast %96 : vector<2x8xf32> to vector<2x8x1xf32>
    %98 = arith.truncf %95 : vector<2x8x8xf32> to vector<2x8x8xbf16>
    %cst_25 = arith.constant dense<0.000000e+00> : vector<2x8x8xf32>
    %99 = tpu.matmul %98, %89, %cst_25 {dimension_numbers = #tpu.dot_dimension_numbers<[2], [1], [1], [2], [0, 0, 0, 1, 1, 2], [0], [0]>} : vector<2x8x8xbf16>, vector<2x8x8xbf16>, vector<2x8x8xf32> -> vector<2x8x8xf32>
    %100 = tpu.reciprocal %97 {approx = true} : vector<2x8x1xf32> -> vector<2x8x1xf32>
    %101 = vector.broadcast %100 : vector<2x8x1xf32> to vector<2x8x8xf32>
    %102 = arith.mulf %99, %101 : vector<2x8x8xf32>
    %103 = vector.shape_cast %102 : vector<2x8x8xf32> to vector<16x8xf32>
    %104 = tpu.concatenate %34, %57, %80, %103 in 1 : vector<16x8xf32>, vector<16x8xf32>, vector<16x8xf32>, vector<16x8xf32> -> vector<16x32xf32>
    %c0_26 = arith.constant 0 : index
    %c0_27 = arith.constant 0 : index
    %105 = vector.load %arg6[%c0_26, %c0_27] : memref<16x32xf32, #tpu.memory_space<vmem>>, vector<16x32xf32>
    tpu.vector_store %arg6[%c0_26, %c0_27], %104 {strides = array<i32>} : memref<16x32xf32, #tpu.memory_space<vmem>>, vector<16x32xf32>,
    return
  }
  func.func @transform_0(%arg0: i32) -> (i32, i32) {
    %c0_i32 = arith.constant 0 : i32
    %c0_i32_0 = arith.constant 0 : i32
    return %arg0, %c0_i32 : i32, i32
  }
  func.func @transform_1(%arg0: i32) -> (i32, i32) {
    %c0_i32 = arith.constant 0 : i32
    %c0_i32_0 = arith.constant 0 : i32
    return %arg0, %c0_i32 : i32, i32
  }
  func.func @transform_2(%arg0: i32) -> (i32, i32) {
    %c0_i32 = arith.constant 0 : i32
    %c0_i32_0 = arith.constant 0 : i32
    %c0_i32_1 = arith.constant 0 : i32
    return %c0_i32, %c0_i32_0 : i32, i32
  }
  func.func @transform_3(%arg0: i32) -> (i32, i32) {
    %c0_i32 = arith.constant 0 : i32
    %c0_i32_0 = arith.constant 0 : i32
    %c0_i32_1 = arith.constant 0 : i32
    return %c0_i32, %c0_i32_0 : i32, i32
  }
  func.func @transform_4(%arg0: i32) -> (i32, i32) {
    %c0_i32 = arith.constant 0 : i32
    %c0_i32_0 = arith.constant 0 : i32
    %c0_i32_1 = arith.constant 0 : i32
    return %c0_i32, %c0_i32_0 : i32, i32
  }
  func.func @transform_5(%arg0: i32) -> (i32, i32) {
    %c0_i32 = arith.constant 0 : i32
    %c0_i32_0 = arith.constant 0 : i32
    return %arg0, %c0_i32 : i32, i32
  }
}

</mosaic_0001>

<bundles_post_ra>
// kernel: tpu_custom_call.1
= control target key start
LH: loop header
LB: loop body
LE: loop exit
PB: predicated region body
PF: predicated region fallthrough
CT: control target
= control target key end

     0   :  { %10 = vsyncpa [#allocation3], 0  ;;  %s1816_s0 = inlined_call_operand.hbm [shape: f32[16,32], index: 0, kind: input, shape index: {}]   ;;  %s1817_s1 = inlined_call_operand.hbm [shape: f32[16,32], index: 1, kind: input, shape index: {}]   ;;  %s1818_s2 = inlined_call_operand.hbm [shape: bf16[32,96], index: 2, kind: input, shape index: {}]   ;;  %s1819_s3 = inlined_call_operand.hbm [shape: bf16[32,96], index: 3, kind: input, shape index: {}]   ;;  %s1820_s4 = inlined_call_operand.vmem [shape: f32[1,96], index: 4, kind: input, shape index: {}]   ;;  %s1821_s5 = inlined_call_operand.hbm [shape: f32[16,32], index: 5, kind: output, shape index: {}]  }
   0x1   :  { %11 = vsyncpa [#allocation6], 0 }
   0x2   :  { %12 = vsyncpa [#allocation9], 0 }
   0x3   :  { %13 = vsyncpa [#allocation4], 0  ;;  %s1498_s18 = smov [#allocation5]   ;;  %s1499_s20 = smov [#allocation2]  }
   0x4   :  { %s31_s19 = sshll.u32 %s1498_s18, 4  ;;  %s19_s21 = sshll.u32 %s1499_s20, 4  ;;  %s32_s19 = int_to_ptr.vmem [resolvable:$true] %s31_s19  ;;  %s1551_s21 = int_to_ptr.vmem [resolvable:$true] %s19_s21 }
   0x5   :  { %s1380_s24 = scalar_lea.hbm %s1817_s1, 256 }
   0x6   :  { %p1381_p0 = scmp.ne.s32.totalorder %s1817_s1, %s1380_s24  ;;  %p1384_p1 = scmp.lt.u32.totalorder %s1380_s24, %s1817_s1 }
   0x8   :  { %p1386_p2 = pnand %p1384_p1, %p1381_p0 }
   0xa   :  { %1389 = shalt.err (!%p1386_p2)
}
   0xb   :  { %s1390_s29 = scalar_lea.vmem %s32_s19, 256  ;;  %p1395_p4 = scmp.lt.s32.totalorder %s32_s19, %s32_s19 }
   0xc   :  { %p1391_p3 = scmp.ne.s32.totalorder %s32_s19, %s1390_s29  ;;  %p1396_p5 = scmp.lt.s32.totalorder %s1390_s29, %s1390_s29 }
   0xe   :  { %p1397_p6 = por %p1396_p5, %p1395_p4 }
  0x10   :  { %p1398_p7 = pnand %p1397_p6, %p1391_p3 }
  0x12   :  { %1401 = shalt.err (!%p1398_p7)
}
  0x13   :  { %s1500_s30 = smov 128   ;;  %s1501_s6 = smov 8  }
  0x14   :  { %37 = dma.hbm_to_vmem [thread:$0]  %s1817_s1, 256, %s32_s19, [#allocation6], %s1500_s30, %s1500_s30, %s1501_s6  }
  0x15   :  { %s1402_s11 = scalar_lea.hbm %s1816_s0, 256 }
  0x16   :  { %p1403_p8 = scmp.ne.s32.totalorder %s1816_s0, %s1402_s11  ;;  %p1406_p9 = scmp.lt.u32.totalorder %s1402_s11, %s1816_s0 }
  0x18   :  { %p1408_p10 = pnand %p1406_p9, %p1403_p8 }
  0x1a   :  { %1411 = shalt.err (!%p1408_p10)
}
  0x1b   :  { %s1412_s16 = scalar_lea.vmem %s1551_s21, 256  ;;  %p1417_p12 = scmp.lt.s32.totalorder %s1551_s21, %s1551_s21 }
  0x1c   :  { %p1413_p11 = scmp.ne.s32.totalorder %s1551_s21, %s1412_s16  ;;  %p1418_p13 = scmp.lt.s32.totalorder %s1412_s16, %s1412_s16 }
  0x1e   :  { %p1419_p0 = por %p1418_p13, %p1417_p12 }
  0x20   :  { %p1420_p1 = pnand %p1419_p0, %p1413_p11 }
  0x22   :  { %1423 = shalt.err (!%p1420_p1)
}
  0x23   :  { %25 = dma.hbm_to_vmem [thread:$0]  %s1816_s0, 256, %s1551_s21, [#allocation3], %s1500_s30, %s1500_s30, %s1501_s6  }
  0x24   :  { %s1502_s18 = smov [#allocation7]   ;;  %s1424_s23 = scalar_lea.hbm %s1818_s2, 256 }
  0x25   :  { %s43_s19 = sshll.u32 %s1502_s18, 4  ;;  %p1425_p2 = scmp.ne.s32.totalorder %s1818_s2, %s1424_s23  ;;  %s44_s19 = int_to_ptr.vmem [resolvable:$true] %s43_s19 }
  0x26   :  { %p1428_p3 = scmp.lt.u32.totalorder %s1424_s23, %s1818_s2 }
  0x28   :  { %p1430_p4 = pnand %p1428_p3, %p1425_p2 }
  0x2a   :  { %1433 = shalt.err (!%p1430_p4)
}
  0x2b   :  { %s1434_s28 = scalar_lea.vmem %s44_s19, 256  ;;  %p1439_p6 = scmp.lt.s32.totalorder %s44_s19, %s44_s19 }
  0x2c   :  { %p1435_p5 = scmp.ne.s32.totalorder %s44_s19, %s1434_s28  ;;  %p1440_p7 = scmp.lt.s32.totalorder %s1434_s28, %s1434_s28 }
  0x2e   :  { %p1441_p8 = por %p1440_p7, %p1439_p6 }
  0x30   :  { %p1442_p9 = pnand %p1441_p8, %p1435_p5 }
  0x32   :  { %1445 = shalt.err (!%p1442_p9)
}
  0x33   :  { %s1503_s0 = smov 64   ;;  %s1504_s21 = smov 4  }
  0x34   :  { %49 = dma.hbm_to_vmem [thread:$0]  %s1818_s2, 256, %s44_s19, [#allocation6], %s1503_s0, %s1503_s0, %s1504_s21  }
  0x35   :  { %s1505_s8 = smov [#allocation8]   ;;  %s1446_s12 = scalar_lea.hbm %s1819_s3, 256 }
  0x36   :  { %s55_s9 = sshll.u32 %s1505_s8, 4  ;;  %p1447_p10 = scmp.ne.s32.totalorder %s1819_s3, %s1446_s12  ;;  %s56_s9 = int_to_ptr.vmem [resolvable:$true] %s55_s9 }
  0x37   :  { %p1450_p11 = scmp.lt.u32.totalorder %s1446_s12, %s1819_s3 }
  0x39   :  { %p1452_p12 = pnand %p1450_p11, %p1447_p10 }
  0x3b   :  { %1455 = shalt.err (!%p1452_p12)
}
  0x3c   :  { %s1456_s1 = scalar_lea.vmem %s56_s9, 256  ;;  %p1461_p0 = scmp.lt.s32.totalorder %s56_s9, %s56_s9 }
  0x3d   :  { %p1457_p13 = scmp.ne.s32.totalorder %s56_s9, %s1456_s1  ;;  %p1462_p1 = scmp.lt.s32.totalorder %s1456_s1, %s1456_s1 }
  0x3f   :  { %p1463_p2 = por %p1462_p1, %p1461_p0 }
  0x41   :  { %p1464_p3 = pnand %p1463_p2, %p1457_p13 }
  0x43   :  { %1467 = shalt.err (!%p1464_p3)
}
  0x44   :  { %61 = dma.hbm_to_vmem [thread:$0]  %s1819_s3, 256, %s56_s9, [#allocation9], %s1503_s0, %s1503_s0, %s1504_s21  }
  0x45   :  { %1490 = dma.done.wait [#allocation3], 256  }
  0x46   :  { %1491 = vsyncadd [#allocation3], 4294967040 }
  0x47   :  { %1492 = dma.done.wait [#allocation6], 512  }
  0x48   :  { %1493 = vsyncadd [#allocation6], 4294966784 }
  0x49   :  { %1494 = dma.done.wait [#allocation9], 256  }
  0x4a   :  { %1495 = vsyncadd [#allocation9], 4294967040  ;;  %v1506_v0 = vmov 0.0   ;;  %vm1507_vm0 = vmmov 0   ;;  %v1344_v1 = vld [vmem:[#allocation8] sm:$0xff]   ;;  %v1345_v2 = vld [vmem:[#allocation7] sm:$0xff]  }
  0x4b   :  { %1209 = vmatprep.subr.bf16.mxu0 %v1506_v0  ;;  %1217 = vmatprep.subr.bf16.mxu1 %v1506_v0  ;;  %v1346_v3 = vld [vmem:[#allocation8 + $0x8] sm:$0xff]   ;;  %v1347_v4 = vld [vmem:[#allocation7 + $0x8] sm:$0xff]   ;;  %v80_v5 = vld [vmem:[#allocation5] sm:$0xff]  ;;  %vm103_vm1 = vcmask 261120   ;;  %s1508_s19 = smov 96   ;;  %s1510_s20 = smov 120  }
  0x4c   :  { %1213 = vmatprep.mubr.msk.bf16.mxu0 %vm1507_vm0, %v1506_v0  ;;  %1221 = vmatprep.mubr.msk.bf16.mxu1 %vm1507_vm0, %v1506_v0  ;;  %v81_v6 = vld [vmem:[#allocation5 + $0x8] sm:$0xff]  ;;  %v77_v7 = vld [vmem:[#allocation2] sm:$0xff]  ;;  %v78_v9 = vld [vmem:[#allocation2 + $0x8] sm:$0xff]  ;;  %s1511_s22 = smov 56   ;;  %vm218_vm2 = vcmask 64512   ;;  %vm339_vm3 = vcmask 1043456  }
  0x4d   :  { %1210 = vmatpush3.bf16.msra.mxu0 %v1344_v1  ;;  %1218 = vmatpush3.bf16.msra.mxu1 %v1345_v2  ;;  %v82_v8 = vpack.c.bf16 %v81_v6, %v80_v5  ;;  %v79_v10 = vpack.c.bf16 %v78_v9, %v77_v7  ;;  %v1154_v13 = vld [vmem:[%s1820_s4] ss:$0 sm:$0xff]  ;;  %s1509_s4 = smov 88   ;;  %s1512_s23 = smov 80   ;;  %vm1124_vm4 = vcmask 195584   ;;  %vm1121_vm5 = vcmask 130048  }
  0x4e   :  { %1211 = vmatprep.subr.bf16.mxu0 %v1506_v0  ;;  %1219 = vmatprep.subr.bf16.mxu1 %v1506_v0  ;;  %s1513_s24 = smov 112   ;;  %s1514_s25 = smov 48  }
  0x4f   :  { %s1515_s26 = smov 72   ;;  %s1516_s27 = smov 104  }
  0x50   :  { %s1517_s28 = smov 40   ;;  %s1519_s21 = smov 24  }
  0x51   :  { %1212 = vmatpush3.bf16.msra.mxu0 %v1346_v3  ;;  %1220 = vmatpush3.bf16.msra.mxu1 %v1347_v4  ;;  %s1520_s29 = smov [#allocation10]  }
  0x52   :  { %1225 = vmatprep.subr.bf16.mxu0 %v1506_v0  ;;  %1231 = vmatprep.subr.bf16.mxu1 %v1506_v0  ;;  %s1134_s7 = sshll.u32 %s1520_s29, 4  ;;  %s1135_s7 = int_to_ptr.vmem [resolvable:$true] %s1134_s7 }
  0x53   :  { %s1468_s8 = scalar_lea.vmem %s1135_s7, 256  ;;  %p1473_p5 = scmp.lt.s32.totalorder %s1135_s7, %s1135_s7 }
  0x54   :  { %1214 = vmatmul.mubr.msk.bf16.vlgmr.msra.gmra.mrb[0].mxu0 %vm103_vm1, %v82_v8  ;;  %1222 = vmatmul.mubr.msk.bf16.vlgmr.msra.gmra.mrb[0].mxu1 %vm103_vm1, %v79_v10  ;;  %p1469_p4 = scmp.ne.s32.totalorder %s1135_s7, %s1468_s8  ;;  %p1474_p6 = scmp.lt.s32.totalorder %s1468_s8, %s1468_s8 }
  0x55   :  { %1227 = vmatprep.mubr.msk.bf16.mxu0 %vm1507_vm0, %v1506_v0  ;;  %1233 = vmatprep.mubr.msk.bf16.mxu1 %vm1507_vm0, %v1506_v0 }
  0x56   :  { %p1475_p7 = por %p1474_p6, %p1473_p5 }
  0x58   :  { %p1476_p8 = pnand %p1475_p7, %p1469_p4 }
 0x127   :  { %v141_v11 = vpop.f32.mrb[0].mxu0  ;;  %v197_v12 = vpop.f32.mrb[0].mxu1 }
 0x128   :  { %v1215_v14 = vpop.f32.mrb[1].mxu0  ;;  %v198_v15 = vadd.f32 %v197_v12, %v141_v11  ;;  %v1223_v16 = vpop.f32.mrb[1].mxu1 }
 0x129   :  { %v144_v17 = vpop.f32.mrb[2].mxu0  ;;  %v200_v18 = vpop.f32.mrb[2].mxu1 }
 0x12a   :  { %v1216_v19 = vpop.f32.mrb[3].mxu0  ;;  %v211_v20 = vadd.f32 %v1154_v13, %v198_v15  ;;  %v201_v21 = vadd.f32 %v200_v18, %v144_v17  ;;  %v1224_v22 = vpop.f32.mrb[3].mxu1 }
 0x12c   :  { %v1635_v23 = vpack.c.bf16 %v211_v20, %v211_v20  ;;  %v212_v24 = vadd.f32 %v1154_v13, %v201_v21 }
 0x12e   :  { %216 = vrot.lane.b32.xlu0 %v1635_v23, %s1508_s19  ;;  %v1638_v25 = vpack.c.bf16 %v212_v24, %v212_v24 }
 0x132   :  { %266 = vrot.lane.b32.xlu0 %v1638_v25, %s1508_s19 }
 0x136   :  { %334 = vrot.lane.b32.xlu0 %v1635_v23, %s1503_s0 }
 0x13a   :  { %437 = vrot.lane.b32.xlu0 %v1635_v23, %s1509_s4 }
 0x13e   :  { %487 = vrot.lane.b32.xlu0 %v1638_v25, %s1509_s4 }
 0x142   :  { %435 = vrot.lane.b32.xlu0 %v1635_v23, %s1510_s20 }
 0x146   :  { %485 = vrot.lane.b32.xlu0 %v1638_v25, %s1510_s20 }
 0x14a   :  { %555 = vrot.lane.b32.xlu0 %v1635_v23, %s1511_s22 }
 0x1a0   :  { %v217_v26 = vpop.permute.xlu0 %216 }
 0x1a1   :  { %v223_v27 = vsel %vm218_vm2, %v217_v26, 0 }
 0x1a2   :  { %1226 = vmatpush3.bf16.xpose.msra.mxu0 %v223_v27 }
 0x1a3   :  { %1237 = vmatprep.subr.bf16.mxu0 %v1506_v0 }
 0x1a4   :  { %v267_v28 = vpop.permute.xlu0 %266 }
 0x1a5   :  { %v272_v29 = vsel %vm218_vm2, %v267_v28, 0 }
 0x1a6   :  { %1232 = vmatpush3.bf16.xpose.msra.mxu1 %v272_v29 }
 0x1a7   :  { %1243 = vmatprep.subr.bf16.mxu1 %v1506_v0 }
 0x1a8   :  { %v335_v30 = vpop.permute.xlu0 %334 }
 0x1a9   :  { %v341_v31 = vsel %vm339_vm3, %v335_v30, 0  ;;  %1228 = vmatmul.mubr.msk.bf16.vlgmr.msra.gmra.mrb[4].mxu0 %vm218_vm2, %v1635_v23 }
 0x1aa   :  { %1238 = vmatpush3.bf16.msra.mxu0 %v341_v31  ;;  %1239 = vmatprep.mubr.msk.bf16.mxu0 %vm1507_vm0, %v1506_v0 }
 0x1ab   :  { %1249 = vmatprep.subr.bf16.mxu0 %v1506_v0 }
 0x1ac   :  { %v438_v42 = vpop.permute.xlu0 %437 }
 0x1ad   :  { %1234 = vmatmul.mubr.msk.bf16.vlgmr.msra.gmra.mrb[4].mxu1 %vm218_vm2, %v1638_v25  ;;  %v443_v56 = vsel %vm218_vm2, %v438_v42, 0 }
 0x1ae   :  { %1245 = vmatprep.mubr.msk.bf16.mxu1 %vm1507_vm0, %v1506_v0 }
 0x1b0   :  { %v488_v47 = vpop.permute.xlu0 %487 }
 0x1b1   :  { %v493_v59 = vsel %vm218_vm2, %v488_v47, 0 }
 0x1b4   :  { %v436_v52 = vpop.permute.xlu0 %435 }
 0x1b8   :  { %v486_v55 = vpop.permute.xlu0 %485 }
 0x1bc   :  { %v556_v60 = vpop.permute.xlu0 %555 }
 0x1bd   :  { %v561_v61 = vsel %vm339_vm3, %v556_v60, 0 }
 0x27c   :  { %v259_v32 = vpop.f32.mrb[4].mxu0 }
 0x27d   :  { %v1229_v33 = vpop.f32.mrb[5].mxu0  ;;  %v314_v34 = vsel %vm218_vm2, %v259_v32, -inf }
 0x27e   :  { %315 = vmax.xlane.f32.xlu1 %v314_v34  ;;  %v262_v35 = vpop.f32.mrb[6].mxu0 }
 0x27f   :  { %v1230_v36 = vpop.f32.mrb[7].mxu0 }
 0x280   :  { %v308_v37 = vpop.f32.mrb[4].mxu1 }
 0x281   :  { %v1235_v38 = vpop.f32.mrb[5].mxu1  ;;  %v317_v39 = vsel %vm218_vm2, %v308_v37, -inf }
 0x282   :  { %318 = vmax.xlane.f32.xlu1 %v317_v39  ;;  %v311_v40 = vpop.f32.mrb[6].mxu1 }
 0x283   :  { %v1236_v41 = vpop.f32.mrb[7].mxu1 }
 0x293   :  { %383 = vrot.lane.b32.xlu1 %v1638_v25, %s1503_s0  ;;  %s1518_s0 = smov 16  }
 0x297   :  { %603 = vrot.lane.b32.xlu1 %v1638_v25, %s1511_s22 }
 0x30b   :  { %v316_v43 = vpop.xlane.xlu1 %315 }
 0x30c   :  { %v320_v44 = vsub.f32 %v259_v32, %v316_v43 }
 0x30e   :  { %v322_v45 = vmul.f32 1.442695, %v320_v44 }
 0x30f   :  { %v319_v46 = vpop.xlane.xlu1 %318 }
 0x310   :  { %1348 = vpow2.f32 %v322_v45  ;;  %v321_v48 = vsub.f32 %v308_v37, %v319_v46 }
 0x312   :  { %v324_v49 = vmul.f32 1.442695, %v321_v48 }
 0x313   :  { %v384_v50 = vpop.permute.xlu1 %383 }
 0x314   :  { %1350 = vpow2.f32 %v324_v49  ;;  %v389_v51 = vsel %vm339_vm3, %v384_v50, 0 }
 0x315   :  { %1244 = vmatpush3.bf16.msra.mxu1 %v389_v51 }
 0x316   :  { %1255 = vmatprep.subr.bf16.mxu1 %v1506_v0 }
 0x317   :  { %v604_v62 = vpop.permute.xlu1 %603 }
 0x318   :  { %v609_v63 = vsel %vm339_vm3, %v604_v62, 0 }
 0x31a   :  { %v1671_v53 = vpop.eup %1348 }
 0x31b   :  { %v332_v54 = vpack.c.bf16 %v1671_v53, %v1671_v53 }
 0x31d   :  { %1240 = vmatmul.mubr.msk.bf16.vlgmr.msra.gmra.mrb[8].mxu0 %vm218_vm2, %v332_v54 }
 0x31e   :  { %v1677_v57 = vpop.eup %1350  ;;  %1250 = vmatpush3.bf16.xpose.msra.mxu0 %v443_v56  ;;  %1251 = vmatprep.mubr.msk.bf16.mxu0 %vm1507_vm0, %v1506_v0 }
 0x31f   :  { %v333_v58 = vpack.c.bf16 %v1677_v57, %v1677_v57  ;;  %1261 = vmatprep.subr.bf16.mxu0 %v1506_v0 }
 0x321   :  { %1246 = vmatmul.mubr.msk.bf16.vlgmr.msra.gmra.mrb[8].mxu1 %vm218_vm2, %v333_v58 }
 0x322   :  { %1256 = vmatpush3.bf16.xpose.msra.mxu1 %v493_v59  ;;  %1257 = vmatprep.mubr.msk.bf16.mxu1 %vm1507_vm0, %v1506_v0 }
 0x323   :  { %1267 = vmatprep.subr.bf16.mxu1 %v1506_v0 }
 0x325   :  { %1252 = vmatmul.mubr.msk.bf16.vlgmr.msra.gmra.mrb[12].mxu0 %vm218_vm2, %v436_v52 }
 0x326   :  { %1262 = vmatpush3.bf16.msra.mxu0 %v561_v61  ;;  %1263 = vmatprep.mubr.msk.bf16.mxu0 %vm1507_vm0, %v1506_v0 }
 0x327   :  { %1273 = vmatprep.subr.bf16.mxu0 %v1506_v0 }
 0x329   :  { %1258 = vmatmul.mubr.msk.bf16.vlgmr.msra.gmra.mrb[12].mxu1 %vm218_vm2, %v486_v55 }
 0x32a   :  { %1268 = vmatpush3.bf16.msra.mxu1 %v609_v63  ;;  %1269 = vmatprep.mubr.msk.bf16.mxu1 %vm1507_vm0, %v1506_v0 }
 0x32b   :  { %1279 = vmatprep.subr.bf16.mxu1 %v1506_v0 }
 0x3f0   :  { %v1699_v1 = vpop.f32.mrb[8].mxu0 }
 0x3f1   :  { %v1241_v2 = vpop.f32.mrb[9].mxu0 }
 0x3f2   :  { %v380_v3 = vpop.f32.mrb[10].mxu0 }
 0x3f3   :  { %v1242_v4 = vpop.f32.mrb[11].mxu0 }
 0x3f4   :  { %v1701_v5 = vpop.f32.mrb[8].mxu1 }
 0x3f5   :  { %v1247_v6 = vpop.f32.mrb[9].mxu1 }
 0x3f6   :  { %v428_v7 = vpop.f32.mrb[10].mxu1 }
 0x3f7   :  { %v1248_v8 = vpop.f32.mrb[11].mxu1 }
 0x3f8   :  { %v479_v9 = vpop.f32.mrb[12].mxu0 }
 0x3f9   :  { %v1253_v10 = vpop.f32.mrb[13].mxu0  ;;  %v535_v11 = vsel %vm218_vm2, %v479_v9, -inf }
 0x3fa   :  { %v482_v12 = vpop.f32.mrb[14].mxu0  ;;  %536 = vmax.xlane.f32.xlu1 %v535_v11 }
 0x3fb   :  { %v1254_v13 = vpop.f32.mrb[15].mxu0 }
 0x3fc   :  { %v529_v14 = vpop.f32.mrb[12].mxu1 }
 0x3fd   :  { %v1259_v15 = vpop.f32.mrb[13].mxu1  ;;  %v538_v16 = vsel %vm218_vm2, %v529_v14, -inf }
 0x3fe   :  { %539 = vmax.xlane.f32.xlu0 %v538_v16  ;;  %v532_v17 = vpop.f32.mrb[14].mxu1 }
 0x3ff   :  { %v1260_v18 = vpop.f32.mrb[15].mxu1 }
 0x40b   :  { %657 = vrot.lane.b32.xlu1 %v1635_v23, %s1512_s23 }
 0x40f   :  { %655 = vrot.lane.b32.xlu1 %v1635_v23, %s1513_s24 }
 0x413   :  { %823 = vrot.lane.b32.xlu1 %v1638_v25, %s1514_s25 }
 0x414   :  { %707 = vrot.lane.b32.xlu0 %v1638_v25, %s1512_s23 }
 0x418   :  { %705 = vrot.lane.b32.xlu0 %v1638_v25, %s1513_s24 }
 0x41c   :  { %775 = vrot.lane.b32.xlu0 %v1635_v23, %s1514_s25 }
 0x487   :  { %v537_v19 = vpop.xlane.xlu1 %536 }
 0x488   :  { %v541_v20 = vsub.f32 %v479_v9, %v537_v19 }
 0x48a   :  { %v543_v21 = vmul.f32 1.442695, %v541_v20 }
 0x48b   :  { %v540_v22 = vpop.xlane.xlu0 %539  ;;  %v658_v29 = vpop.permute.xlu1 %657 }
 0x48c   :  { %1352 = vpow2.f32 %v543_v21  ;;  %v542_v24 = vsub.f32 %v529_v14, %v540_v22  ;;  %v663_v32 = vsel %vm218_vm2, %v658_v29, 0 }
 0x48e   :  { %v545_v26 = vmul.f32 1.442695, %v542_v24 }
 0x48f   :  { %v708_v27 = vpop.permute.xlu0 %707  ;;  %v656_v35 = vpop.permute.xlu1 %655 }
 0x490   :  { %1354 = vpow2.f32 %v545_v26  ;;  %v713_v36 = vsel %vm218_vm2, %v708_v27, 0 }
 0x493   :  { %v706_v31 = vpop.permute.xlu0 %705  ;;  %v824_v39 = vpop.permute.xlu1 %823 }
 0x494   :  { %v829_v40 = vsel %vm339_vm3, %v824_v39, 0 }
 0x496   :  { %v1711_v28 = vpop.eup %1352 }
 0x497   :  { %v553_v30 = vpack.c.bf16 %v1711_v28, %v1711_v28  ;;  %v776_v37 = vpop.permute.xlu0 %775 }
 0x498   :  { %v781_v38 = vsel %vm339_vm3, %v776_v37, 0  ;;  %v547_v37 = vsel %vm218_vm2, %v1711_v28, 0.0 }
 0x499   :  { %1264 = vmatmul.mubr.msk.bf16.vlgmr.msra.gmra.mrb[16].mxu0 %vm218_vm2, %v553_v30 }
 0x49a   :  { %v1717_v33 = vpop.eup %1354  ;;  %1274 = vmatpush3.bf16.xpose.msra.mxu0 %v663_v32  ;;  %1275 = vmatprep.mubr.msk.bf16.mxu0 %vm1507_vm0, %v1506_v0 }
 0x49b   :  { %v554_v34 = vpack.c.bf16 %v1717_v33, %v1717_v33  ;;  %1285 = vmatprep.subr.bf16.mxu0 %v1506_v0  ;;  %v550_v39 = vsel %vm218_vm2, %v1717_v33, 0.0 }
 0x49d   :  { %1270 = vmatmul.mubr.msk.bf16.vlgmr.msra.gmra.mrb[16].mxu1 %vm218_vm2, %v554_v34 }
 0x49e   :  { %1280 = vmatpush3.bf16.xpose.msra.mxu1 %v713_v36  ;;  %1281 = vmatprep.mubr.msk.bf16.mxu1 %vm1507_vm0, %v1506_v0 }
 0x49f   :  { %1291 = vmatprep.subr.bf16.mxu1 %v1506_v0 }
 0x4a1   :  { %1276 = vmatmul.mubr.msk.bf16.vlgmr.msra.gmra.mrb[20].mxu0 %vm218_vm2, %v656_v35 }
 0x4a2   :  { %1286 = vmatpush3.bf16.msra.mxu0 %v781_v38  ;;  %1287 = vmatprep.mubr.msk.bf16.mxu0 %vm1507_vm0, %v1506_v0 }
 0x4a3   :  { %1297 = vmatprep.subr.bf16.mxu0 %v1506_v0 }
 0x4a5   :  { %1282 = vmatmul.mubr.msk.bf16.vlgmr.msra.gmra.mrb[20].mxu1 %vm218_vm2, %v706_v31 }
 0x4a6   :  { %1292 = vmatpush3.bf16.msra.mxu1 %v829_v40  ;;  %1293 = vmatprep.mubr.msk.bf16.mxu1 %vm1507_vm0, %v1506_v0 }
 0x4a7   :  { %1303 = vmatprep.subr.bf16.mxu1 %v1506_v0 }
 0x56c   :  { %v1739_v41 = vpop.f32.mrb[16].mxu0 }
 0x56d   :  { %v1265_v42 = vpop.f32.mrb[17].mxu0 }
 0x56e   :  { %v600_v43 = vpop.f32.mrb[18].mxu0 }
 0x56f   :  { %v1266_v44 = vpop.f32.mrb[19].mxu0 }
 0x570   :  { %v1741_v45 = vpop.f32.mrb[16].mxu1 }
 0x571   :  { %v1271_v46 = vpop.f32.mrb[17].mxu1 }
 0x572   :  { %v648_v47 = vpop.f32.mrb[18].mxu1 }
 0x573   :  { %v1272_v48 = vpop.f32.mrb[19].mxu1 }
 0x574   :  { %v699_v49 = vpop.f32.mrb[20].mxu0 }
 0x575   :  { %v1277_v50 = vpop.f32.mrb[21].mxu0  ;;  %v755_v51 = vsel %vm218_vm2, %v699_v49, -inf }
 0x576   :  { %756 = vmax.xlane.f32.xlu1 %v755_v51  ;;  %v702_v52 = vpop.f32.mrb[22].mxu0 }
 0x577   :  { %v1278_v54 = vpop.f32.mrb[23].mxu0 }
 0x578   :  { %v749_v55 = vpop.f32.mrb[20].mxu1  ;;  %v326_v54 = vsel %vm218_vm2, %v1671_v53, 0.0 }
 0x579   :  { %v1283_v56 = vpop.f32.mrb[21].mxu1  ;;  %v758_v58 = vsel %vm218_vm2, %v749_v55, -inf }
 0x57a   :  { %759 = vmax.xlane.f32.xlu0 %v758_v58  ;;  %v752_v59 = vpop.f32.mrb[22].mxu1  ;;  %v329_v58 = vsel %vm218_vm2, %v1677_v57, 0.0 }
 0x57b   :  { %v1284_v60 = vpop.f32.mrb[23].mxu1 }
 0x587   :  { %877 = vrot.lane.b32.xlu1 %v1635_v23, %s1515_s26 }
 0x58b   :  { %875 = vrot.lane.b32.xlu1 %v1635_v23, %s1516_s27 }
 0x590   :  { %927 = vrot.lane.b32.xlu0 %v1638_v25, %s1515_s26 }
 0x594   :  { %925 = vrot.lane.b32.xlu0 %v1638_v25, %s1516_s27 }
 0x603   :  { %v757_v61 = vpop.xlane.xlu1 %756 }
 0x604   :  { %v761_v62 = vsub.f32 %v699_v49, %v757_v61 }
 0x606   :  { %v763_v63 = vmul.f32 1.442695, %v761_v62 }
 0x607   :  { %v760_v2 = vpop.xlane.xlu0 %759  ;;  %v878_v7 = vpop.permute.xlu1 %877 }
 0x608   :  { %1356 = vpow2.f32 %v763_v63  ;;  %v762_v3 = vsub.f32 %v749_v55, %v760_v2  ;;  %v883_v9 = vsel %vm218_vm2, %v878_v7, 0 }
 0x60a   :  { %v765_v4 = vmul.f32 1.442695, %v762_v3 }
 0x60b   :  { %v928_v11 = vpop.permute.xlu0 %927  ;;  %v876_v14 = vpop.permute.xlu1 %875 }
 0x60c   :  { %1358 = vpow2.f32 %v765_v4  ;;  %v933_v13 = vsel %vm218_vm2, %v928_v11, 0 }
 0x60f   :  { %v926_v15 = vpop.permute.xlu0 %925 }
 0x612   :  { %v1357_v6 = vpop.eup %1356 }
 0x613   :  { %v773_v8 = vpack.c.bf16 %v1357_v6, %v1357_v6  ;;  %v767_v40 = vsel %vm218_vm2, %v1357_v6, 0.0 }
 0x615   :  { %1288 = vmatmul.mubr.msk.bf16.vlgmr.msra.gmra.mrb[24].mxu0 %vm218_vm2, %v773_v8 }
 0x616   :  { %v1359_v10 = vpop.eup %1358  ;;  %1298 = vmatpush3.bf16.xpose.msra.mxu0 %v883_v9  ;;  %1299 = vmatprep.mubr.msk.bf16.mxu0 %vm1507_vm0, %v1506_v0 }
 0x617   :  { %v774_v12 = vpack.c.bf16 %v1359_v10, %v1359_v10  ;;  %1309 = vmatprep.subr.bf16.mxu0 %v1506_v0  ;;  %v770_v38 = vsel %vm218_vm2, %v1359_v10, 0.0 }
 0x619   :  { %1294 = vmatmul.mubr.msk.bf16.vlgmr.msra.gmra.mrb[24].mxu1 %vm218_vm2, %v774_v12 }
 0x61a   :  { %1304 = vmatpush3.bf16.xpose.msra.mxu1 %v933_v13  ;;  %1305 = vmatprep.mubr.msk.bf16.mxu1 %vm1507_vm0, %v1506_v0 }
 0x61b   :  { %1315 = vmatprep.subr.bf16.mxu1 %v1506_v0 }
 0x61d   :  { %1300 = vmatmul.mubr.msk.bf16.vlgmr.msra.gmra.mrb[28].mxu0 %vm218_vm2, %v876_v14 }
 0x61e   :  { %1311 = vmatprep.mubr.msk.bf16.mxu0 %vm1507_vm0, %v1506_v0 }
 0x621   :  { %1306 = vmatmul.mubr.msk.bf16.vlgmr.msra.gmra.mrb[28].mxu1 %vm218_vm2, %v926_v15 }
 0x622   :  { %1317 = vmatprep.mubr.msk.bf16.mxu1 %vm1507_vm0, %v1506_v0 }
 0x6e8   :  { %v1765_v16 = vpop.f32.mrb[24].mxu0 }
 0x6e9   :  { %v1289_v17 = vpop.f32.mrb[25].mxu0 }
 0x6ea   :  { %v820_v18 = vpop.f32.mrb[26].mxu0 }
 0x6eb   :  { %v1290_v19 = vpop.f32.mrb[27].mxu0 }
 0x6ec   :  { %v1767_v20 = vpop.f32.mrb[24].mxu1 }
 0x6ed   :  { %v1295_v21 = vpop.f32.mrb[25].mxu1 }
 0x6ee   :  { %v868_v22 = vpop.f32.mrb[26].mxu1 }
 0x6ef   :  { %v1296_v24 = vpop.f32.mrb[27].mxu1 }
 0x6f0   :  { %v919_v26 = vpop.f32.mrb[28].mxu0 }
 0x6f1   :  { %v1301_v27 = vpop.f32.mrb[29].mxu0  ;;  %v975_v29 = vsel %vm218_vm2, %v919_v26, -inf }
 0x6f2   :  { %976 = vmax.xlane.f32.xlu1 %v975_v29  ;;  %v922_v30 = vpop.f32.mrb[30].mxu0 }
 0x6f3   :  { %v1302_v31 = vpop.f32.mrb[31].mxu0 }
 0x6f4   :  { %v969_v32 = vpop.f32.mrb[28].mxu1 }
 0x6f5   :  { %v1307_v34 = vpop.f32.mrb[29].mxu1  ;;  %v978_v0 = vsel %vm218_vm2, %v969_v32, -inf }
 0x6f6   :  { %979 = vmax.xlane.f32.xlu0 %v978_v0  ;;  %v972_v35 = vpop.f32.mrb[30].mxu1 }
 0x6f7   :  { %v1308_v36 = vpop.f32.mrb[31].mxu1 }
 0x703   :  { %1043 = vrot.lane.b32.xlu1 %v1638_v25, %s1517_s28 }
 0x70c   :  { %995 = vrot.lane.b32.xlu0 %v1635_v23, %s1517_s28 }
 0x727   :  { %548 = vadd.xlane.f32.xlu1 %v547_v37 }
 0x72b   :  { %771 = vadd.xlane.f32.xlu1 %v770_v38  ;;  %551 = vadd.xlane.f32.xlu0 %v550_v39 }
 0x72f   :  { %768 = vadd.xlane.f32.xlu0 %v767_v40 }
 0x77f   :  { %v977_v42 = vpop.xlane.xlu1 %976 }
 0x780   :  { %v981_v43 = vsub.f32 %v919_v26, %v977_v42 }
 0x782   :  { %v983_v44 = vmul.f32 1.442695, %v981_v43 }
 0x783   :  { %v1044_v25 = vpop.permute.xlu1 %1043  ;;  %v980_v46 = vpop.xlane.xlu0 %979 }
 0x784   :  { %1360 = vpow2.f32 %v983_v44  ;;  %v1049_v23 = vsel %vm339_vm3, %v1044_v25, 0  ;;  %v982_v28 = vsub.f32 %v969_v32, %v980_v46 }
 0x785   :  { %1316 = vmatpush3.bf16.msra.mxu1 %v1049_v23 }
 0x786   :  { %v985_v47 = vmul.f32 1.442695, %v982_v28 }
 0x787   :  { %v996_v48 = vpop.permute.xlu0 %995 }
 0x788   :  { %1362 = vpow2.f32 %v985_v47  ;;  %v1001_v33 = vsel %vm339_vm3, %v996_v48, 0 }
 0x789   :  { %1310 = vmatpush3.bf16.msra.mxu0 %v1001_v33 }
 0x78e   :  { %v1361_v49 = vpop.eup %1360 }
 0x78f   :  { %v987_v50 = vsel %vm218_vm2, %v1361_v49, 0.0  ;;  %v993_v51 = vpack.c.bf16 %v1361_v49, %v1361_v49 }
 0x790   :  { %988 = vadd.xlane.f32.xlu0 %v987_v50 }
 0x791   :  { %1312 = vmatmul.mubr.msk.bf16.vlgmr.msra.gmra.mrb[32].mxu0 %vm218_vm2, %v993_v51 }
 0x792   :  { %v1363_v52 = vpop.eup %1362 }
 0x793   :  { %v990_v55 = vsel %vm218_vm2, %v1363_v52, 0.0  ;;  %v994_v56 = vpack.c.bf16 %v1363_v52, %v1363_v52 }
 0x794   :  { %327 = vadd.xlane.f32.xlu0 %v326_v54  ;;  %991 = vadd.xlane.f32.xlu1 %v990_v55 }
 0x795   :  { %1318 = vmatmul.mubr.msk.bf16.vlgmr.msra.gmra.mrb[32].mxu1 %vm218_vm2, %v994_v56 }
 0x798   :  { %330 = vadd.xlane.f32.xlu1 %v329_v58 }
 0x7b4   :  { %v549_v59 = vpop.xlane.xlu1 %548 }
 0x7b5   :  { %1364 = vrcp.f32 %v549_v59 }
 0x7b8   :  { %v772_v60 = vpop.xlane.xlu1 %771  ;;  %v552_v61 = vpop.xlane.xlu0 %551 }
 0x7b9   :  { %1366 = vrcp.f32 %v772_v60 }
 0x7ba   :  { %1368 = vrcp.f32 %v552_v61 }
 0x7bc   :  { %v769_v62 = vpop.xlane.xlu0 %768 }
 0x7bd   :  { %1370 = vrcp.f32 %v769_v62 }
 0x7bf   :  { %v1365_v53 = vpop.eup %1364 }
 0x7c0   :  { %v653_v63 = vmul.f32 %v1365_v53, %v1739_v41 }
 0x7c2   :  { %1097 = vrot.lane.b32.xlu0 %v653_v63, %s1501_s6 }
 0x7c3   :  { %v1367_v2 = vpop.eup %1366 }
 0x7c4   :  { %v1369_v3 = vpop.eup %1368  ;;  %v874_v4 = vmul.f32 %v1367_v2, %v1767_v20 }
 0x7c5   :  { %v654_v57 = vmul.f32 %v1369_v3, %v1741_v45 }
 0x7c6   :  { %1107 = vrot.lane.b32.xlu0 %v874_v4, %s1518_s0 }
 0x7c7   :  { %v1371_v6 = vpop.eup %1370  ;;  %1099 = vrot.lane.b32.xlu1 %v654_v57, %s1501_s6 }
 0x7c8   :  { %v873_v7 = vmul.f32 %v1371_v6, %v1765_v16 }
 0x7cb   :  { %1105 = vrot.lane.b32.xlu1 %v873_v7, %s1518_s0 }
 0x81d   :  { %v989_v8 = vpop.xlane.xlu0 %988 }
 0x81e   :  { %1372 = vrcp.f32 %v989_v8 }
 0x821   :  { %v992_v9 = vpop.xlane.xlu1 %991  ;;  %v328_v20 = vpop.xlane.xlu0 %327 }
 0x822   :  { %1374 = vrcp.f32 %v992_v9 }
 0x823   :  { %1376 = vrcp.f32 %v328_v20 }
 0x825   :  { %v331_v21 = vpop.xlane.xlu1 %330 }
 0x826   :  { %1378 = vrcp.f32 %v331_v21 }
 0x828   :  { %v1373_v41 = vpop.eup %1372 }
 0x82c   :  { %v1375_v45 = vpop.eup %1374 }
 0x82d   :  { %v1377_v24 = vpop.eup %1376 }
 0x82e   :  { %v433_v30 = vmul.f32 %v1377_v24, %v1699_v1 }
 0x830   :  { %v1379_v27 = vpop.eup %1378 }
 0x831   :  { %v434_v32 = vmul.f32 %v1379_v27, %v1701_v5 }
 0x834   :  { %v1098_v26 = vpop.permute.xlu0 %1097 }
 0x835   :  { %v1119_v31 = vsel %vm218_vm2, %v433_v30, %v1098_v26 }
 0x838   :  { %v1108_v34 = vpop.permute.xlu0 %1107 }
 0x839   :  { %v1100_v22 = vpop.permute.xlu1 %1099 }
 0x83a   :  { %v1120_v36 = vsel %vm218_vm2, %v434_v32, %v1100_v22 }
 0x83b   :  { %v1123_v38 = vsel %vm1121_vm5, %v1120_v36, %v1108_v34 }
 0x83d   :  { %v1106_v29 = vpop.permute.xlu1 %1105 }
 0x83e   :  { %v1122_v0 = vsel %vm1121_vm5, %v1119_v31, %v1106_v29 }
 0x864   :  { %v1037_v10 = vpop.f32.mrb[32].mxu0 }
 0x865   :  { %v1093_v11 = vmul.f32 %v1373_v41, %v1037_v10  ;;  %v1313_v12 = vpop.f32.mrb[33].mxu0 }
 0x866   :  { %v1040_v13 = vpop.f32.mrb[34].mxu0 }
 0x867   :  { %v1314_v14 = vpop.f32.mrb[35].mxu0  ;;  %1113 = vrot.lane.b32.xlu1 %v1093_v11, %s1519_s21 }
 0x868   :  { %v1085_v15 = vpop.f32.mrb[32].mxu1 }
 0x869   :  { %v1094_v17 = vmul.f32 %v1375_v45, %v1085_v15  ;;  %v1319_v18 = vpop.f32.mrb[33].mxu1 }
 0x86a   :  { %v1088_v19 = vpop.f32.mrb[34].mxu1 }
 0x86b   :  { %1115 = vrot.lane.b32.xlu0 %v1094_v17, %s1519_s21  ;;  %v1320_v16 = vpop.f32.mrb[35].mxu1 }
 0x8d9   :  { %v1114_v35 = vpop.permute.xlu1 %1113 }
 0x8da   :  { %v1125_v37 = vsel %vm1124_vm4, %v1122_v0, %v1114_v35 }
 0x8db   :  { %1127 = vst.msk [vmem:[#allocation10] sm:$0xff] %vm103_vm1, %v1125_v37 }
 0x8dd   :  { %v1116_v39 = vpop.permute.xlu0 %1115 }
 0x8de   :  { %v1126_v1 = vsel %vm1124_vm4, %v1123_v38, %v1116_v39 }
 0x8df   :  { %1128 = vst.msk [vmem:[#allocation10 + $0x8] sm:$0xff] %vm103_vm1, %v1126_v1 }
 0x8e0   :  { %1479 = shalt.err (!%p1476_p8)
}
 0x8e1   :  { %s1480_s11 = scalar_lea.hbm %s1821_s5, 256 }
 0x8e2   :  { %p1481_p9 = scmp.ne.s32.totalorder %s1821_s5, %s1480_s11  ;;  %p1484_p10 = scmp.lt.u32.totalorder %s1480_s11, %s1821_s5 }
 0x8e4   :  { %p1486_p11 = pnand %p1484_p10, %p1481_p9 }
 0x8e6   :  { %1489 = shalt.err (!%p1486_p11)
}
 0x8e7   :  { %1140 = dma.vmem_to_hbm [thread:$0]  %s1135_s7, 256, %s1821_s5, [#allocation4], %s1500_s30, %s1500_s30, %s1501_s6  }
 0x8e8   :  { %1496 = dma.done.wait [#allocation4], 256  }
 0x8e9   :  { %1497 = vsyncadd [#allocation4], 4294967040 }
 0x8ea   :  { %1144 = vsyncpa [#allocation3], 1 }
 0x8eb   :  { %1145 = vsyncpa [#allocation6], 1 }
 0x8ec   :  { %1146 = vsyncpa [#allocation9], 1 }
 0x8ed   :  { %1147 = vsyncpa [#allocation4], 1 }

</bundles_post_ra>
